<compile_context>
chip_gen: v5e
topology: v5e:2x2
jax: 0.10.0
libtpu: 0.0.40
codegen_flags: <defaults>
</compile_context>

<pallas_src>
import math
from collections.abc import Iterable
from typing import Tuple, Union

import jax
import jax.numpy as jnp
from jax.experimental import pallas as pl
from jax.experimental.pallas import tpu as pltpu

_LANE = 128   # target packed lane width
_SUB = 128    # target packed sublane height


def _round_up(a: int, b: int) -> int:
    return ((a + b - 1) // b) * b


def _next_pow2(n: int) -> int:
    p = 1
    while p < n:
        p *= 2
    return p


# ---------------------------------------------------------------------------
# Pallas kernel: separable Gaussian blur as two MXU matmuls per block.
#   pass 1:  tmp = x @ MwBD        (conv along W, one tall matmul)
#   pass 2:  out = MhtBD @ tmp     (conv along H, per-super-image matmul)
# ---------------------------------------------------------------------------
def _rasterize_kernel(x_ref, mw_ref, mht_ref, o_ref, tmp_ref):
    tb, sh, sw = x_ref.shape
    mw = mw_ref[...]          # (SW, SW)  block-diagonal conv-along-W matrix
    mht = mht_ref[...]        # (SH, SH)  block-diagonal conv-along-H matrix (Mh^T)

    # Pass 1: conv along W -- single tall, weight-stationary MXU matmul over
    # the whole block of packed super-images (no broadcast of mw).
    tmp_ref[...] = (
        jnp.dot(x_ref[...].reshape(tb * sh, sw), mw,
                preferred_element_type=jnp.float32)
        .astype(tmp_ref.dtype)
        .reshape(tb, sh, sw)
    )

    # Pass 2: conv along H -- per super-image left-multiply by the shared
    # block-diagonal Mh^T.  Static unrolled loop; lane-dense f32 stores.
    for i in range(tb):
        o_ref[i] = jnp.dot(mht, tmp_ref[i],
                           preferred_element_type=jnp.float32
                           ).astype(o_ref.dtype)


def _banded_conv_matrix(k1d: jax.Array, size: int) -> jax.Array:
    """M[s, j] = k1d[s - j + pad] (0 outside the band): x @ M is a 'same' 1-D conv."""
    ksize = k1d.shape[0]
    pad = (ksize - 1) // 2
    i = jnp.arange(size)[:, None]
    j = jnp.arange(size)[None, :]
    idx = i - j + pad
    valid = (idx >= 0) & (idx < ksize)
    return jnp.where(valid, k1d[jnp.clip(idx, 0, ksize - 1)], 0.0).astype(jnp.float32)


def _blockdiag(m: jax.Array, rep: int) -> jax.Array:
    if rep == 1:
        return m
    return jnp.kron(jnp.eye(rep, dtype=m.dtype), m)


def rasterize_pallas(x: jax.Array, k1d: jax.Array, *,
                     compute_dtype=jnp.bfloat16) -> jax.Array:
    """Depthwise 'same' Gaussian blur of a (C,H,W) or (B,C,H,W) tensor (float32 out)."""
    orig_shape = x.shape
    assert x.ndim in (3, 4), "expected 3-D (C,H,W) or 4-D (B,C,H,W) input"
    H, W = int(orig_shape[-2]), int(orig_shape[-1])
    n_imgs = int(math.prod(orig_shape[:-2]))
    ci = jnp.dtype(compute_dtype).itemsize

    # ---- lane / sublane packing factors ------------------------------------
    if W >= _LANE:
        Wp, G = _round_up(W, _LANE), 1
    else:
        Wp = _next_pow2(W)
        G = _LANE // Wp
    if H >= _SUB:
        Hp, G2 = _round_up(H, 8), 1
    else:
        Hp = _next_pow2(H)
        G2 = _SUB // Hp
    # Don't pad a tiny batch all the way up to a full 128-sublane slab.
    G2 = min(G2, max(1, pl.cdiv(n_imgs, G)))
    if Hp < 8:
        G2 = _round_up(G2, 8 // Hp)      # keep the packed sublane dim a multiple of 8
    SH, SW = G2 * Hp, G * Wp
    gg = G * G2

    # ---- generation-aware VMEM budget & block sizing ------------------------
    try:
        vmem_cap = int(pltpu.get_tpu_info().vmem_capacity_bytes)
    except Exception:
        vmem_cap = 64 * 1024 * 1024       # conservative (v7x-sized) fallback
    vmem_limit = min(vmem_cap * 3 // 4, 100 * 1024 * 1024)
    block_budget = int(vmem_limit * 0.55)

    # double-buffered (constant-index) conv matrices + per-super-image cost:
    #   2x in (double buffer, compute dtype) + 2x out (f32, double buffer)
    #   + tmp scratch (compute dtype) + transient f32 pass-1 result.
    mats_bytes = 2 * ci * (SW * SW + SH * SH)
    per_slab = SH * SW * (3 * ci + 12)
    assert mats_bytes + per_slab <= block_budget, (
        "image too large for the dense separable-matmul formulation")
    # TODO(synk): for very large H/W (>~2k) tile the conv matrices over their
    # diagonal band (or use a VPU shift-and-add separable pass) instead of dense (H,H)/(W,W).
    tb_max = max(1, (block_budget - mats_bytes) // per_slab)
    tb_max = min(tb_max, 64)              # bound the unrolled H-pass loop / vreg pressure

    np0 = pl.cdiv(n_imgs, gg)                        # number of packed super-images
    tb = min(tb_max, max(1, pl.cdiv(np0, 2)))        # keep >= 2 grid steps (v7x megacore)
    npk = pl.cdiv(np0, tb) * tb                      # tb | npk -> no partial trailing block
    n_pad = npk * gg
    grid = (npk // tb,)

    # ---- pack: (N, H, W) -> (NP, G2*Hp, G*Wp), images dense along lanes -----
    xf = x.reshape(n_imgs, H, W).astype(compute_dtype)
    if (n_pad, Hp, Wp) != (n_imgs, H, W):
        xf = jnp.pad(xf, ((0, n_pad - n_imgs), (0, Hp - H), (0, Wp - W)))
    xp = (xf.reshape(n_pad // G, G, Hp, Wp)
            .transpose(0, 2, 1, 3)
            .reshape(npk, SH, SW))

    # ---- block-diagonal banded conv matrices (zero padding folded in) -------
    mw_bd = _blockdiag(_banded_conv_matrix(k1d, Wp), G).astype(compute_dtype)      # (SW, SW)
    mht_bd = _blockdiag(_banded_conv_matrix(k1d, Hp), G2).T.astype(compute_dtype)  # (SH, SH)

    out_p = pl.pallas_call(
        _rasterize_kernel,
        out_shape=jax.ShapeDtypeStruct((npk, SH, SW), jnp.float32),
        grid_spec=pltpu.PrefetchScalarGridSpec(
            num_scalar_prefetch=0,
            grid=grid,
            in_specs=[
                pl.BlockSpec((tb, SH, SW), lambda i: (i, 0, 0)),
                # Constant-index conv matrices: fetched once, never re-DMA'd.
                # (pipeline_mode=pl.Buffered(3) on the x spec is a further knob
                #  if profiling still shows exposed DMA.)
                pl.BlockSpec((SW, SW), lambda i: (0, 0)),
                pl.BlockSpec((SH, SH), lambda i: (0, 0)),
            ],
            out_specs=pl.BlockSpec((tb, SH, SW), lambda i: (i, 0, 0)),
            scratch_shapes=[pltpu.VMEM((tb, SH, SW), compute_dtype)],
        ),
        compiler_params=pltpu.CompilerParams(
            dimension_semantics=("parallel",),
            vmem_limit_bytes=int(vmem_limit),
        ),
        cost_estimate=pl.CostEstimate(
            flops=2 * npk * SH * SW * (SH + SW),
            transcendentals=0,
            bytes_accessed=npk * SH * SW * (ci + 4) + ci * (SH * SH + SW * SW),
        ),
    )(xp, mw_bd, mht_bd)

    # ---- unpack --------------------------------------------------------------
    out = (out_p.reshape(n_pad // G, Hp, G, Wp)
                .transpose(0, 2, 1, 3)
                .reshape(n_pad, Hp, Wp))[:n_imgs, :H, :W]
    return out.reshape(orig_shape)


class Rasterize:
    """JAX/Pallas port of the PyTorch Rasterize module (random-sigma Gaussian blur)."""

    def __init__(self, sigmas: Union[float, Iterable], normalize: bool,
                 compute_dtype=jnp.bfloat16):
        if isinstance(sigmas, float):
            self.sigmas = (sigmas,)
        elif isinstance(sigmas, Iterable):
            self.sigmas = tuple(sigmas)
        else:
            raise Exception("Invalid sigma. Expected float or Iterable[float]. "
                            "Received type {0}".format(type(sigmas)))
        assert min(self.sigmas) > 0.0, "The minimum value of sigmas should be > 0.0."
        self.normalize = normalize
        self.compute_dtype = compute_dtype
        self.kernels_1d: Tuple[jax.Array, ...] = tuple(
            self._make_kernel_1d(s) for s in self.sigmas)
        self.kernels_len = len(self.kernels_1d)

    def _make_kernel_1d(self, sigma: float) -> jax.Array:
        n = int(1 + 2 * math.ceil(4.0 * sigma))
        d_over_sigma = jnp.linspace(-4.0, 4.0, 2 * n + 1)
        k1d = jnp.exp(-0.5 * d_over_sigma ** 2).astype(jnp.float32)
        if self.normalize:
            # outer(k/S, k/S) == outer(k, k) / sum(outer(k, k))  (exact separability)
            k1d = k1d / jnp.sum(k1d)
        return k1d

    def __call__(self, x: jax.Array, key: jax.Array) -> jax.Array:
        # Mirrors torch.randint(low=0, high=len, size=[1]).item(): one host-side
        # draw per forward call (kernel sizes differ per sigma -> untraceable).
        index = int(jax.random.randint(key, (), 0, self.kernels_len))
        return rasterize_pallas(x, self.kernels_1d[index],
                                compute_dtype=self.compute_dtype)


# ---------------------------------------------------------------------------
# Pure-JAX reference matching the PyTorch forward (full 2-D depthwise conv).
# ---------------------------------------------------------------------------
def _make_kernel_2d_ref(sigma: float, normalize: bool) -> jax.Array:
    n = int(1 + 2 * math.ceil(4.0 * sigma))
    d = jnp.linspace(-4.0, 4.0, 2 * n + 1)
    k2d = jnp.exp(-0.5 * (d[:, None] ** 2 + d[None, :] ** 2)).astype(jnp.float32)
    if normalize:
        k2d = k2d / jnp.sum(k2d)
    return k2d


def rasterize_ref(x: jax.Array, sigma: float, normalize: bool) -> jax.Array:
    squeeze = (x.ndim == 3)
    x4 = (x[None] if squeeze else x).astype(jnp.float32)
    c = x4.shape[1]
    k2d = _make_kernel_2d_ref(sigma, normalize)
    ksize = k2d.shape[0]
    pad = (ksize - 1) // 2
    weight = jnp.broadcast_to(k2d[None, None], (c, 1, ksize, ksize))
    out = jax.lax.conv_general_dilated(
        x4, weight, window_strides=(1, 1),
        padding=((pad, pad), (pad, pad)),
        dimension_numbers=('NCHW', 'OIHW', 'NCHW'),
        feature_group_count=c)
    return out[0] if squeeze else out


def _assert_close(name, out, ref, rel):
    # Scale-aware check: structural/packing bugs give errors ~O(scale); the
    # thresholds leave >=2x margin over the analytic bf16-rounding worst case.
    scale = 1.0 + float(jnp.max(jnp.abs(ref)))
    err = float(jnp.max(jnp.abs(out.astype(jnp.float32) - ref)))
    assert err <= rel * scale, f"{name}: max|err|={err:.4g} > {rel}*scale({scale:.3g})"


if __name__ == "__main__":
    key = jax.random.PRNGKey(0)
    k_data, k_idx = jax.random.split(key)

    B, C, H, W = 2, 4, 16, 16
    x = jax.random.normal(k_data, (B, C, H, W), dtype=jnp.float32)
    sigmas = (0.5, 1.0)

    rasterize = Rasterize(sigmas=sigmas, normalize=True)

    # End-to-end forward with the module's random kernel choice (bf16 compute).
    out = jax.block_until_ready(rasterize(x, k_idx))
    chosen = int(jax.random.randint(k_idx, (), 0, len(sigmas)))
    ref = rasterize_ref(x, sigmas[chosen], True)
    assert out.shape == ref.shape and out.dtype == jnp.float32
    _assert_close("module forward (bf16)", out, ref, 0.035)

    # Exercise every kernel size deterministically (both sigmas, normalized).
    for i, sigma in enumerate(sigmas):
        o = jax.block_until_ready(rasterize_pallas(x, rasterize.kernels_1d[i]))
        _assert_close(f"sigma={sigma} (bf16)", o, rasterize_ref(x, sigma, True), 0.035)

    # f32 compute path (same kernel, compute_dtype knob).
    o32 = jax.block_until_ready(
        rasterize_pallas(x, rasterize.kernels_1d[1], compute_dtype=jnp.float32))
    _assert_close("sigma=1.0 (f32)", o32, rasterize_ref(x, 1.0, True), 0.035)

    # Un-normalized kernels.
    rast_unnorm = Rasterize(sigmas=0.5, normalize=False)
    ou = jax.block_until_ready(rasterize_pallas(x, rast_unnorm.kernels_1d[0]))
    _assert_close("unnormalized (bf16)", ou, rasterize_ref(x, 0.5, False), 0.06)

    # 3-D (C, H, W) input path (the module supports both 3-D and 4-D).
    x3 = x[0]
    o3 = jax.block_until_ready(rasterize_pallas(x3, rasterize.kernels_1d[0]))
    r3 = rasterize_ref(x3, sigmas[0], True)
    assert o3.shape == r3.shape
    _assert_close("3-D input (bf16)", o3, r3, 0.035)

    print("KERNEL_OK")
</pallas_src>

<mosaic_0001>
module attributes {stable_mosaic.version = 11 : i64} {
  func.func @_rasterize_kernel(%arg0: i32, %arg1: memref<1x16x128xbf16, #tpu.memory_space<vmem>>, %arg2: memref<128x128xbf16, #tpu.memory_space<vmem>>, %arg3: memref<16x16xbf16, #tpu.memory_space<vmem>>, %arg4: memref<1x16x128xf32, #tpu.memory_space<vmem>>, %arg5: memref<1x16x128xbf16, #tpu.memory_space<vmem>>) attributes {dimension_semantics = [#tpu.dimension_semantics<parallel>], iteration_bounds = array<i64: 1>, scalar_prefetch = 0 : i64, scratch_operands = 1 : i64, tpu.core_type = #tpu.core_type<tc>, window_params = [{transform_indices = @transform_0, window_bounds = array<i64: 1, 16, 128>}, {pipeline_mode = #tpu.pipeline_mode<synchronous>, transform_indices = @transform_1, window_bounds = array<i64: 128, 128>}, {pipeline_mode = #tpu.pipeline_mode<synchronous>, transform_indices = @transform_2, window_bounds = array<i64: 16, 16>}, {transform_indices = @transform_3, window_bounds = array<i64: 1, 16, 128>}]} {
    %c0 = arith.constant 0 : index
    %c0_0 = arith.constant 0 : index
    %0 = vector.load %arg2[%c0, %c0_0] : memref<128x128xbf16, #tpu.memory_space<vmem>>, vector<128x128xbf16>
    %c0_1 = arith.constant 0 : index
    %c0_2 = arith.constant 0 : index
    %1 = vector.load %arg3[%c0_1, %c0_2] : memref<16x16xbf16, #tpu.memory_space<vmem>>, vector<16x16xbf16>
    %c0_3 = arith.constant 0 : index
    %c0_4 = arith.constant 0 : index
    %c0_5 = arith.constant 0 : index
    %2 = vector.load %arg1[%c0_3, %c0_4, %c0_5] : memref<1x16x128xbf16, #tpu.memory_space<vmem>>, vector<1x16x128xbf16>
    %3 = vector.shape_cast %2 : vector<1x16x128xbf16> to vector<16x128xbf16>
    %cst = arith.constant dense<0.000000e+00> : vector<16x128xf32>
    %4 = tpu.matmul %3, %0, %cst {dimension_numbers = #tpu.dot_dimension_numbers<[1], [0], [0], [1], [0, 0, 1, 1], [], []>} : vector<16x128xbf16>, vector<128x128xbf16>, vector<16x128xf32> -> vector<16x128xf32>
    %5 = arith.truncf %4 : vector<16x128xf32> to vector<16x128xbf16>
    %6 = vector.shape_cast %5 : vector<16x128xbf16> to vector<1x16x128xbf16>
    %c0_6 = arith.constant 0 : index
    %c0_7 = arith.constant 0 : index
    %c0_8 = arith.constant 0 : index
    %7 = vector.load %arg5[%c0_6, %c0_7, %c0_8] : memref<1x16x128xbf16, #tpu.memory_space<vmem>>, vector<1x16x128xbf16>
    tpu.vector_store %arg5[%c0_6, %c0_7, %c0_8], %6 {strides = array<i32>} : memref<1x16x128xbf16, #tpu.memory_space<vmem>>, vector<1x16x128xbf16>,
    %c0_9 = arith.constant 0 : index
    %c0_10 = arith.constant 0 : index
    %c0_11 = arith.constant 0 : index
    %8 = vector.load %arg5[%c0_9, %c0_10, %c0_11] : memref<1x16x128xbf16, #tpu.memory_space<vmem>>, vector<1x16x128xbf16>
    %9 = vector.shape_cast %8 : vector<1x16x128xbf16> to vector<16x128xbf16>
    %cst_12 = arith.constant dense<0.000000e+00> : vector<16x128xf32>
    %10 = tpu.matmul %1, %9, %cst_12 {dimension_numbers = #tpu.dot_dimension_numbers<[1], [0], [0], [1], [0, 0, 1, 1], [], []>} : vector<16x16xbf16>, vector<16x128xbf16>, vector<16x128xf32> -> vector<16x128xf32>
    %c0_13 = arith.constant 0 : index
    %c0_14 = arith.constant 0 : index
    %c0_15 = arith.constant 0 : index
    %11 = vector.load %arg4[%c0_13, %c0_14, %c0_15] : memref<1x16x128xf32, #tpu.memory_space<vmem>>, vector<1x16x128xf32>
    %12 = vector.shape_cast %11 : vector<1x16x128xf32> to vector<16x128xf32>
    %13 = vector.shape_cast %10 : vector<16x128xf32> to vector<1x16x128xf32>
    tpu.vector_store %arg4[%c0_13, %c0_14, %c0_15], %13 {strides = array<i32>} : memref<1x16x128xf32, #tpu.memory_space<vmem>>, vector<1x16x128xf32>,
    return
  }
  func.func @transform_0(%arg0: i32) -> (i32, i32, i32) {
    %c0_i32 = arith.constant 0 : i32
    %c0_i32_0 = arith.constant 0 : i32
    %c0_i32_1 = arith.constant 0 : i32
    return %arg0, %c0_i32, %c0_i32_0 : i32, i32, i32
  }
  func.func @transform_1(%arg0: i32) -> (i32, i32) {
    %c0_i32 = arith.constant 0 : i32
    %c0_i32_0 = arith.constant 0 : i32
    %c0_i32_1 = arith.constant 0 : i32
    return %c0_i32, %c0_i32_0 : i32, i32
  }
  func.func @transform_2(%arg0: i32) -> (i32, i32) {
    %c0_i32 = arith.constant 0 : i32
    %c0_i32_0 = arith.constant 0 : i32
    %c0_i32_1 = arith.constant 0 : i32
    return %c0_i32, %c0_i32_0 : i32, i32
  }
  func.func @transform_3(%arg0: i32) -> (i32, i32, i32) {
    %c0_i32 = arith.constant 0 : i32
    %c0_i32_0 = arith.constant 0 : i32
    %c0_i32_1 = arith.constant 0 : i32
    return %arg0, %c0_i32, %c0_i32_0 : i32, i32, i32
  }
}

</mosaic_0001>

<bundles_post_ra>
// kernel: tpu_custom_call.1
= control target key start
LH: loop header
LB: loop body
LE: loop exit
PB: predicated region body
PF: predicated region fallthrough
CT: control target
= control target key end

     0   :  { %8 = vsyncpa [#allocation4], 0  ;;  %s419_s0 = inlined_call_operand.hbm [shape: bf16[1,16,128], index: 0, kind: input, shape index: {}]   ;;  %s420_s1 = inlined_call_operand.hbm [shape: bf16[128,128], index: 1, kind: input, shape index: {}]   ;;  %s421_s2 = inlined_call_operand.hbm [shape: bf16[16,16], index: 2, kind: input, shape index: {}]   ;;  %s422_s3 = inlined_call_operand.hbm [shape: f32[1,16,128], index: 3, kind: output, shape index: {}]  }
   0x1   :  { %9 = vsyncpa [#allocation7], 0 }
   0x2   :  { %10 = vsyncpa [#allocation5], 0  ;;  %s28_s14 = sshll.u32 %s420_s1, 4  ;;  %s379_s15 = smov [#allocation6]   ;;  %s29_s14 = int_to_ptr.hbm [resolvable:$true] %s28_s14 }
   0x3   :  { %s30_s16 = sshll.u32 %s379_s15, 4  ;;  %s15_s19 = sshll.u32 %s419_s0, 4  ;;  %s31_s16 = int_to_ptr.vmem [resolvable:$true] %s30_s16  ;;  %s16_s19 = int_to_ptr.hbm [resolvable:$true] %s15_s19 }
   0x4   :  { %s380_s20 = smov 64   ;;  %s381_s21 = smov 4  }
   0x5   :  { %36 = dma.hbm_to_vmem [thread:$0]  %s29_s14, 1024, %s31_s16, [#allocation7], %s380_s20, %s380_s20, %s381_s21  }
   0x6   :  { %s382_s22 = smov [#allocation3]   ;;  %s41_s26 = sshll.u32 %s421_s2, 4  ;;  %s42_s26 = int_to_ptr.hbm [resolvable:$true] %s41_s26 }
   0x7   :  { %s17_s23 = sshll.u32 %s382_s22, 4  ;;  %s383_s1 = smov [#allocation8]   ;;  %s18_s23 = int_to_ptr.vmem [resolvable:$true] %s17_s23 }
   0x8   :  { %23 = dma.hbm_to_vmem [thread:$0]  %s16_s19, 128, %s18_s23, [#allocation4], %s380_s20, %s380_s20, %s381_s21  }
   0x9   :  { %s43_s27 = sshll.u32 %s383_s1, 4  ;;  %s44_s27 = int_to_ptr.vmem [resolvable:$true] %s43_s27 }
   0xa   :  { %49 = dma.hbm_to_vmem [thread:$0]  %s42_s26, 128, %s44_s27, [#allocation7], %s380_s20, %s380_s20, %s381_s21  }
   0xb   :  { %373 = dma.done.wait [#allocation4], 128  }
   0xc   :  { %374 = vsyncadd [#allocation4], 4294967168 }
   0xd   :  { %375 = dma.done.wait [#allocation7], 1152  }
   0xe   :  { %376 = vsyncadd [#allocation7], 4294966144  ;;  %v260_v0 = vld [vmem:[#allocation6 + $0x38] sm:$0xff]  ;;  %v259_v1 = vld [vmem:[#allocation6 + $0x30] sm:$0xff]  ;;  %vm168_vm0 = vcmask 130048   ;;  %s384_s0 = smov [#allocation9]  }
   0xf   :  { %137 = vmatpush.bf16.msra.mxu0 %v260_v0  ;;  %v258_v2 = vld [vmem:[#allocation6 + $0x28] sm:$0xff]  ;;  %v257_v3 = vld [vmem:[#allocation6 + $0x20] sm:$0xff]  ;;  %v256_v4 = vld [vmem:[#allocation6 + $0x18] sm:$0xff]  ;;  %s192_s2 = sshll.u32 %s384_s0, 4  ;;  %s194_s30 = sshll.u32 %s422_s3, 4  ;;  %s193_s2 = int_to_ptr.vmem [resolvable:$true] %s192_s2  ;;  %s195_s30 = int_to_ptr.hbm [resolvable:$true] %s194_s30 }
  0x10   :  { %v255_v5 = vld [vmem:[#allocation6 + $0x10] sm:$0xff]  ;;  %v254_v6 = vld [vmem:[#allocation6 + $0x8] sm:$0xff]  ;;  %v253_v7 = vld [vmem:[#allocation6] sm:$0xff]  ;;  %s385_s4 = smov 128   ;;  %s386_s5 = smov 8  }
  0x11   :  { %v262_v8 = vld [vmem:[#allocation3] sm:$0xff]  ;;  %v261_v13 = vld [vmem:[#allocation8] sm:$0xff] }
  0x13   :  { %138 = vmatpush.bf16.msra.mxu0 %v259_v1 }
  0x17   :  { %139 = vmatpush.bf16.msra.mxu0 %v258_v2 }
  0x1b   :  { %140 = vmatpush.bf16.msra.mxu0 %v257_v3 }
  0x1f   :  { %141 = vmatpush.bf16.msra.mxu0 %v256_v4 }
  0x23   :  { %142 = vmatpush.bf16.msra.mxu0 %v255_v5 }
  0x27   :  { %143 = vmatpush.bf16.msra.mxu0 %v254_v6 }
  0x2b   :  { %144 = vmatpush.bf16.msra.mxu0 %v253_v7 }
  0x2e   :  { %145 = vmatmul.bf16.vlgmr.msra.gmra.mxu0 %v262_v8 }
  0xab   :  { %v146_v9 = vpop.f32.mrf.mxu0 }
  0xb3   :  { %v148_v10 = vpop.f32.mrf.mxu0 }
  0xb4   :  { %v267_v11 = vpack.c.bf16 %v148_v10, %v146_v9 }
  0xb6   :  { %268 = vst [vmem:[#allocation2] sm:$0xff] %v267_v11  }
  0xbd   :  { %v263_v12 = vld [vmem:[#allocation2] sm:$0xff] }
  0xbe   :  { %179 = vmatpush.bf16.msra.mxu1 %v263_v12 }
  0xc1   :  { %252 = vmatmul.msk.bf16.vlgmr.msra.gmra.mxu1 %vm168_vm0, %v261_v13 }
 0x13e   :  { %v181_v14 = vpop.f32.mrf.mxu1 }
 0x13f   :  { %186 = vst [vmem:[#allocation9] sm:$0xff] %v181_v14 }
 0x146   :  { %v183_v15 = vpop.f32.mrf.mxu1 }
 0x147   :  { %187 = vst [vmem:[#allocation9 + $0x8] sm:$0xff] %v183_v15 }
 0x148   :  { %200 = dma.vmem_to_hbm [thread:$0]  %s193_s2, 256, %s195_s30, [#allocation5], %s385_s4, %s385_s4, %s386_s5  }
 0x149   :  { %377 = dma.done.wait [#allocation5], 256  }
 0x14a   :  { %378 = vsyncadd [#allocation5], 4294967040 }
 0x14b   :  { %205 = vsyncpa [#allocation4], 1 }
 0x14c   :  { %206 = vsyncpa [#allocation7], 1 }
 0x14d   :  { %207 = vsyncpa [#allocation5], 1 }

</bundles_post_ra>
